<compile_context>
chip_gen: v5e
topology: v5e:2x2
jax: 0.10.0
libtpu: 0.0.40
codegen_flags: <defaults>
</compile_context>

<pallas_src>
import jax
import jax.numpy as jnp
from jax.experimental import pallas as pl
from jax.experimental.pallas import tpu as pltpu

_MIB = 1024 * 1024


# ----------------------------------------------------------------------------- kernels
def _svm_linear_kernel(x_ref, w_ref, b_ref, o_ref):
    # x: [tm, D] (x dtype), w: [D, Cp] pre-transposed (compute dtype), b: [1, Cp] f32.
    # Cast x in-kernel (hidden under MXU/DMA); accumulate in f32; f32 bias add.
    acc = jnp.dot(x_ref[...].astype(w_ref.dtype), w_ref[...],
                  preferred_element_type=jnp.float32)
    o_ref[...] = (acc + b_ref[...]).astype(o_ref.dtype)


def _svm_linear_kernel_ktiled(x_ref, w_ref, b_ref, o_ref, acc_ref):
    # Same computation with the contraction dim split across the last grid axis.
    k = pl.program_id(1)

    @pl.when(k == 0)
    def _():
        acc_ref[...] = jnp.zeros_like(acc_ref)

    acc_ref[...] += jnp.dot(x_ref[...].astype(w_ref.dtype), w_ref[...],
                            preferred_element_type=jnp.float32)

    @pl.when(k == pl.num_programs(1) - 1)
    def _():
        o_ref[...] = (acc_ref[...] + b_ref[...]).astype(o_ref.dtype)


# ----------------------------------------------------------------------------- helpers
def _round_up(n: int, m: int) -> int:
    return ((n + m - 1) // m) * m


def _vmem_capacity_bytes() -> int:
    try:
        return int(pltpu.get_tpu_info().vmem_capacity_bytes)
    except Exception:
        return 64 * _MIB  # conservative fallback: smallest per-TensorCore VMEM (v7x)


def _choose_tm(batch, k_cols, c_pad, tm_max, x_isz, out_isz,
               resident_bytes, acc_per_row_bytes, vmem_budget):
    """Largest batch tile (multiple of 8, <= tm_max) whose footprint fits the budget."""
    tm = max(8, min(_round_up(tm_max, 8), _round_up(batch, 8)))

    def footprint(t):
        return (2 * t * k_cols * x_isz        # double-buffered x tile
                + 2 * t * c_pad * out_isz     # double-buffered output tile
                + t * acc_per_row_bytes       # f32 accumulator (K-tiled path only)
                + resident_bytes)             # resident weight + bias

    while tm > 8 and footprint(tm) > vmem_budget:
        tm = max(8, _round_up(tm // 2, 8))
    return tm, footprint(tm)


# ----------------------------------------------------------------------------- wrapper
def multiclass_svm_forward(x, weight, bias, *, tm=None, tk=None,
                           compute_dtype=None, out_dtype=None):
    """y = x @ weight.T + bias (PyTorch nn.Linear forward) via Pallas.

    x:      [B, D] float32
    weight: [C, D] float32 (PyTorch Linear layout)
    bias:   [C]    float32
    compute_dtype: jnp.bfloat16 selects the MXU bf16 fast path on v5e/v6e/v7x;
                   x is cast in-kernel, accumulation and bias add stay float32.
    out_dtype: output dtype (defaults to x.dtype); bf16 halves store bytes.
    tk: force the K-tiled (large input_dim) path with this contraction tile.
    """
    B, D = x.shape
    C, D2 = weight.shape
    assert D == D2 and bias.shape == (C,)

    out_dtype = out_dtype if out_dtype is not None else x.dtype
    in_dtype = compute_dtype if compute_dtype is not None else x.dtype
    x_isz = jnp.dtype(x.dtype).itemsize
    in_isz = jnp.dtype(in_dtype).itemsize
    out_isz = jnp.dtype(out_dtype).itemsize

    Cp = _round_up(C, 128)  # lane-dense class dim -> unmasked vector stores

    cap = _vmem_capacity_bytes()
    vmem_budget = int(0.75 * cap)      # ~96 MiB on v5e/v6e, ~48 MiB on v7x
    dual_tc = cap <= 64 * _MIB         # v7x heuristic: 64 MiB VMEM per TensorCore

    if tm is None:
        tm = 512 if cap >= 128 * _MIB else 256
    if dual_tc and B > 8:
        # Guarantee >= 2 batch blocks so the "parallel" axis lands on both TensorCores.
        tm = min(tm, _round_up(-(-B // 2), 8))

    # One-time (small) layout work: pre-transpose + class-pad the weight, f32 bias row.
    w_t = jnp.pad(weight.T, ((0, 0), (0, Cp - C))).astype(in_dtype)            # [D, Cp]
    b_p = jnp.pad(bias.astype(jnp.float32).reshape(1, C), ((0, 0), (0, Cp - C)))

    bias_bytes = 2 * Cp * 4
    weight_bytes = D * Cp * in_isz     # resident weight, single-buffered
    use_ktiled = (tk is not None) or (weight_bytes + bias_bytes > vmem_budget // 2)

    if not use_ktiled:
        tm_eff, est = _choose_tm(B, D, Cp, tm, x_isz, out_isz,
                                 weight_bytes + bias_bytes, 0, vmem_budget)
        vmem_limit = int(min(max(2 * est, 32 * _MIB), int(0.82 * cap)))
        grid = (pl.cdiv(B, tm_eff),)

        def run(single_buffer):
            resident = dict(pipeline_mode=pl.Buffered(1)) if single_buffer else {}
            return pl.pallas_call(
                _svm_linear_kernel,
                out_shape=jax.ShapeDtypeStruct((B, Cp), out_dtype),
                grid_spec=pltpu.PrefetchScalarGridSpec(
                    num_scalar_prefetch=0,
                    grid=grid,
                    in_specs=[
                        pl.BlockSpec((tm_eff, D), lambda i: (i, 0)),          # x tile
                        pl.BlockSpec((D, Cp), lambda i: (0, 0), **resident),  # weight
                        pl.BlockSpec((1, Cp), lambda i: (0, 0), **resident),  # bias
                    ],
                    out_specs=pl.BlockSpec((tm_eff, Cp), lambda i: (i, 0)),
                ),
                compiler_params=pltpu.CompilerParams(
                    dimension_semantics=("parallel",),  # shards across v7x's 2 TCs
                    vmem_limit_bytes=vmem_limit,
                ),
            )(x, w_t, b_p)

        try:
            out = run(single_buffer=True)
        except Exception:
            # Fallback if this JAX build rejects pipeline_mode / Buffered(1).
            out = run(single_buffer=False)
        return out[:, :C]

    # ---- K-tiled path (large input_dim): reduce over D on an "arbitrary" last axis.
    if tk is None:
        tk = max(128, (vmem_budget // 3 // (2 * Cp * in_isz)) // 128 * 128)
    tk = min(_round_up(D, 128), _round_up(tk, 128))
    Dp = _round_up(D, tk)
    x_in, w_in = x, w_t
    if Dp != D:
        # Only in K-tiled mode with a non-divisible D: zero-pad the contraction dim
        # so a ragged K block can never feed garbage into the accumulator.
        x_in = jnp.pad(x, ((0, 0), (0, Dp - D)))
        w_in = jnp.pad(w_t, ((0, Dp - D), (0, 0)))

    resident = 2 * tk * Cp * in_isz + bias_bytes   # weight K-tiles are double-buffered
    tm_eff, est = _choose_tm(B, tk, Cp, tm, x_isz, out_isz,
                             resident, Cp * 4, vmem_budget)
    vmem_limit = int(min(max(2 * est, 32 * _MIB), int(0.82 * cap)))
    grid = (pl.cdiv(B, tm_eff), Dp // tk)

    out = pl.pallas_call(
        _svm_linear_kernel_ktiled,
        out_shape=jax.ShapeDtypeStruct((B, Cp), out_dtype),
        grid_spec=pltpu.PrefetchScalarGridSpec(
            num_scalar_prefetch=0,
            grid=grid,
            in_specs=[
                pl.BlockSpec((tm_eff, tk), lambda i, k: (i, k)),   # x tile
                pl.BlockSpec((tk, Cp), lambda i, k: (k, 0)),       # weight K-tile
                pl.BlockSpec((1, Cp), lambda i, k: (0, 0)),        # bias (resident)
            ],
            out_specs=pl.BlockSpec((tm_eff, Cp), lambda i, k: (i, 0)),
            scratch_shapes=[pltpu.VMEM((tm_eff, Cp), jnp.float32)],
        ),
        compiler_params=pltpu.CompilerParams(
            dimension_semantics=("parallel", "arbitrary"),
            vmem_limit_bytes=vmem_limit,
        ),
    )(x_in, w_in, b_p)
    return out[:, :C]


def init_params(key, input_dim, num_classes):
    """Deterministic init mirroring torch.nn.Linear default (uniform +/- 1/sqrt(fan_in))."""
    kw, kb = jax.random.split(key)
    bound = 1.0 / jnp.sqrt(jnp.float32(input_dim))
    weight = jax.random.uniform(
        kw, (num_classes, input_dim), jnp.float32, minval=-bound, maxval=bound)
    bias = jax.random.uniform(
        kb, (num_classes,), jnp.float32, minval=-bound, maxval=bound)
    return weight, bias


if __name__ == "__main__":
    key = jax.random.PRNGKey(0)
    kx, kp = jax.random.split(key)

    batch = 100          # NOT a tile multiple -> exercises the masked ragged last block
    input_dim = 256      # gene-expression feature dim
    num_classes = 10     # padded to 128 lanes inside the kernel

    x = jax.random.normal(kx, (batch, input_dim), jnp.float32)
    weight, bias = init_params(kp, input_dim, num_classes)

    # High-precision reference (kernel accumulates in f32 on the MXU).
    y_ref = jnp.dot(x, weight.T, precision=jax.lax.Precision.HIGHEST) + bias

    # 1) Default f32 path: resident weight, single 1-D "parallel" batch grid.
    y = jax.block_until_ready(multiclass_svm_forward(x, weight, bias))
    assert y.shape == (batch, num_classes)
    assert jnp.allclose(y, y_ref, atol=5e-3, rtol=5e-3)

    # 2) bf16 MXU fast path (v5e/v6e/v7x): x cast in-kernel, f32 accumulation.
    y_bf16 = jax.block_until_ready(
        multiclass_svm_forward(x, weight, bias, compute_dtype=jnp.bfloat16))
    assert y_bf16.shape == (batch, num_classes)
    assert jnp.allclose(y_bf16, y_ref, atol=1e-1, rtol=1e-1)

    # 3) Force the K-tiled (large input_dim) path to exercise the accumulator kernel.
    y_kt = jax.block_until_ready(multiclass_svm_forward(x, weight, bias, tk=128))
    assert y_kt.shape == (batch, num_classes)
    assert jnp.allclose(y_kt, y_ref, atol=5e-3, rtol=5e-3)

    print("KERNEL_OK")
</pallas_src>

<mosaic_0001>
module attributes {stable_mosaic.version = 11 : i64} {
  func.func @_svm_linear_kernel(%arg0: i32, %arg1: memref<56x256xf32, #tpu.memory_space<vmem>>, %arg2: memref<256x128xf32, #tpu.memory_space<vmem>>, %arg3: memref<1x128xf32, #tpu.memory_space<vmem>>, %arg4: memref<56x128xf32, #tpu.memory_space<vmem>>) attributes {dimension_semantics = [#tpu.dimension_semantics<parallel>], iteration_bounds = array<i64: 2>, scalar_prefetch = 0 : i64, scratch_operands = 0 : i64, tpu.core_type = #tpu.core_type<tc>, window_params = [{transform_indices = @transform_0, window_bounds = array<i64: 56, 256>}, {pipeline_mode = #tpu.pipeline_mode<synchronous>, transform_indices = @transform_1, window_bounds = array<i64: 256, 128>}, {pipeline_mode = #tpu.pipeline_mode<synchronous>, transform_indices = @transform_2, window_bounds = array<i64: 1, 128>}, {transform_indices = @transform_3, window_bounds = array<i64: 56, 128>}]} {
    %c0 = arith.constant 0 : index
    %c0_0 = arith.constant 0 : index
    %0 = vector.load %arg1[%c0, %c0_0] : memref<56x256xf32, #tpu.memory_space<vmem>>, vector<56x256xf32>
    %c0_1 = arith.constant 0 : index
    %c0_2 = arith.constant 0 : index
    %1 = vector.load %arg2[%c0_1, %c0_2] : memref<256x128xf32, #tpu.memory_space<vmem>>, vector<256x128xf32>
    %cst = arith.constant dense<0.000000e+00> : vector<56x128xf32>
    %2 = tpu.matmul %0, %1, %cst {dimension_numbers = #tpu.dot_dimension_numbers<[1], [0], [0], [1], [0, 0, 1, 1], [], []>} : vector<56x256xf32>, vector<256x128xf32>, vector<56x128xf32> -> vector<56x128xf32>
    %c0_3 = arith.constant 0 : index
    %c0_4 = arith.constant 0 : index
    %3 = vector.load %arg3[%c0_3, %c0_4] : memref<1x128xf32, #tpu.memory_space<vmem>>, vector<1x128xf32>
    %4 = vector.broadcast %3 : vector<1x128xf32> to vector<56x128xf32>
    %5 = arith.addf %2, %4 : vector<56x128xf32>
    %c0_5 = arith.constant 0 : index
    %c0_6 = arith.constant 0 : index
    %6 = vector.load %arg4[%c0_5, %c0_6] : memref<56x128xf32, #tpu.memory_space<vmem>>, vector<56x128xf32>
    tpu.vector_store %arg4[%c0_5, %c0_6], %5 {strides = array<i32>} : memref<56x128xf32, #tpu.memory_space<vmem>>, vector<56x128xf32>,
    return
  }
  func.func @transform_0(%arg0: i32) -> (i32, i32) {
    %c0_i32 = arith.constant 0 : i32
    %c0_i32_0 = arith.constant 0 : i32
    return %arg0, %c0_i32 : i32, i32
  }
  func.func @transform_1(%arg0: i32) -> (i32, i32) {
    %c0_i32 = arith.constant 0 : i32
    %c0_i32_0 = arith.constant 0 : i32
    %c0_i32_1 = arith.constant 0 : i32
    return %c0_i32, %c0_i32_0 : i32, i32
  }
  func.func @transform_2(%arg0: i32) -> (i32, i32) {
    %c0_i32 = arith.constant 0 : i32
    %c0_i32_0 = arith.constant 0 : i32
    %c0_i32_1 = arith.constant 0 : i32
    return %c0_i32, %c0_i32_0 : i32, i32
  }
  func.func @transform_3(%arg0: i32) -> (i32, i32) {
    %c0_i32 = arith.constant 0 : i32
    %c0_i32_0 = arith.constant 0 : i32
    return %arg0, %c0_i32 : i32, i32
  }
}

module attributes {stable_mosaic.version = 11 : i64} {
  func.func @_svm_linear_kernel(%arg0: i32, %arg1: memref<56x256xf32, #tpu.memory_space<vmem>>, %arg2: memref<256x128xf32, #tpu.memory_space<vmem>>, %arg3: memref<1x128xf32, #tpu.memory_space<vmem>>, %arg4: memref<56x128xf32, #tpu.memory_space<vmem>>) attributes {dimension_semantics = [#tpu.dimension_semantics<parallel>], iteration_bounds = array<i64: 2>, scalar_prefetch = 0 : i64, scratch_operands = 0 : i64, tpu.core_type = #tpu.core_type<tc>, window_params = [{transform_indices = @transform_0, window_bounds = array<i64: 56, 256>}, {pipeline_mode = #tpu.pipeline_mode<synchronous>, transform_indices = @transform_1, window_bounds = array<i64: 256, 128>}, {pipeline_mode = #tpu.pipeline_mode<synchronous>, transform_indices = @transform_2, window_bounds = array<i64: 1, 128>}, {transform_indices = @transform_3, window_bounds = array<i64: 56, 128>}]} {
    %c0 = arith.constant 0 : index
    %c0_0 = arith.constant 0 : index
    %0 = vector.load %arg1[%c0, %c0_0] : memref<56x256xf32, #tpu.memory_space<vmem>>, vector<56x256xf32>
    %c0_1 = arith.constant 0 : index
    %c0_2 = arith.constant 0 : index
    %1 = vector.load %arg2[%c0_1, %c0_2] : memref<256x128xf32, #tpu.memory_space<vmem>>, vector<256x128xf32>
    %cst = arith.constant dense<0.000000e+00> : vector<56x128xf32>
    %2 = tpu.matmul %0, %1, %cst {dimension_numbers = #tpu.dot_dimension_numbers<[1], [0], [0], [1], [0, 0, 1, 1], [], []>} : vector<56x256xf32>, vector<256x128xf32>, vector<56x128xf32> -> vector<56x128xf32>
    %c0_3 = arith.constant 0 : index
    %c0_4 = arith.constant 0 : index
    %3 = vector.load %arg3[%c0_3, %c0_4] : memref<1x128xf32, #tpu.memory_space<vmem>>, vector<1x128xf32>
    %4 = vector.broadcast %3 : vector<1x128xf32> to vector<56x128xf32>
    %5 = arith.addf %2, %4 : vector<56x128xf32>
    %c0_5 = arith.constant 0 : index
    %c0_6 = arith.constant 0 : index
    %6 = vector.load %arg4[%c0_5, %c0_6] : memref<56x128xf32, #tpu.memory_space<vmem>>, vector<56x128xf32>
    tpu.vector_store %arg4[%c0_5, %c0_6], %5 {strides = array<i32>} : memref<56x128xf32, #tpu.memory_space<vmem>>, vector<56x128xf32>,
    return
  }
  func.func @transform_0(%arg0: i32) -> (i32, i32) {
    %c0_i32 = arith.constant 0 : i32
    %c0_i32_0 = arith.constant 0 : i32
    return %arg0, %c0_i32 : i32, i32
  }
  func.func @transform_1(%arg0: i32) -> (i32, i32) {
    %c0_i32 = arith.constant 0 : i32
    %c0_i32_0 = arith.constant 0 : i32
    %c0_i32_1 = arith.constant 0 : i32
    return %c0_i32, %c0_i32_0 : i32, i32
  }
  func.func @transform_2(%arg0: i32) -> (i32, i32) {
    %c0_i32 = arith.constant 0 : i32
    %c0_i32_0 = arith.constant 0 : i32
    %c0_i32_1 = arith.constant 0 : i32
    return %c0_i32, %c0_i32_0 : i32, i32
  }
  func.func @transform_3(%arg0: i32) -> (i32, i32) {
    %c0_i32 = arith.constant 0 : i32
    %c0_i32_0 = arith.constant 0 : i32
    return %arg0, %c0_i32 : i32, i32
  }
}

</mosaic_0001>

<bundles_post_ra>
// kernel: tpu_custom_call.1
= control target key start
LH: loop header
LB: loop body
LE: loop exit
PB: predicated region body
PF: predicated region fallthrough
CT: control target
= control target key end

     0   :  { %8 = vsyncpa [#allocation3], 0  ;;  %s993_s0 = inlined_call_operand.hbm [shape: f32[100,256], index: 0, kind: input, shape index: {}]   ;;  %s994_s1 = inlined_call_operand.hbm [shape: f32[256,128], index: 1, kind: input, shape index: {}]   ;;  %s995_s2 = inlined_call_operand.vmem [shape: f32[1,128], index: 2, kind: input, shape index: {}]   ;;  %s996_s3 = inlined_call_operand.hbm [shape: f32[100,128], index: 3, kind: output, shape index: {}]  }
   0x1   :  { %10 = vsyncpa [#allocation3 + $0x1], 0 }
   0x2   :  { %11 = vsyncpa [#allocation6], 0 }
   0x3   :  { %12 = vsyncpa [#allocation4], 0 }
   0x4   :  { %14 = vsyncpa [#allocation4 + $0x1], 0  ;;  %s765_s12 = smov 0   ;;  %s767_s13 = smov 0  }
   0x5   :  { %s769_s14 = smov 0   ;;  %s771_s15 = smov 0  }
   0x6 LB: > { %s786_s16 = sadd.s32 4294967295, %s734_s15   ;;  %s467_s17 = sadd.s32 4294967294, %s734_s15   ;;  %s734_s15 = sphi %s771_s15, %s1013_s15   ;;  %s730_s14 = sphi %s769_s14, %s1012_s14   ;;  %s726_s13 = sphi %s767_s13, %s1011_s13   ;;  %s722_s12 = sphi %s765_s12, %s1010_s12  }
   0x7   : > { %s790_s18 = sadd.s32 1, %s734_s15   ;;  %s27_s19 = sadd.s32 1, %s730_s14 }
   0x8   : > { %s24_s20 = ssub.s32 %s734_s15, %s790_s18  ;;  %p34_p0 = scmp.ne.s32.totalorder %s730_s14, %s726_s13 }
   0x9   : > { %p25_p1 = scmp.eq.s32.totalorder %s24_s20, 0  ;;  %p35_p2 = scmp.eq.s32.totalorder %s734_s15, 0 }
   0xa   : > { %p40_p3 = scmp.ne.s32.totalorder %s726_s13, %s722_s12  ;;  %p998_p4 = scmp.eq.s32.totalorder %s786_s16, 0 }
   0xb   : > { %s802_s21 = scalar_select %p25_p1, %s730_s14, %s27_s19  }
   0xc   : > { %p804_p5 = por %p35_p2, %p34_p0  ;;  %p810_p6 = por %p998_p4, %p40_p3 }
   0xd   : > { %p106_p7 = scmp.eq.s32.totalorder %s786_s16, 1  ;;  %p112_p8 = scmp.eq.s32.totalorder %s467_s17, 1 }
   0xe   : > { %p468_p9 = scmp.ge.s32.totalorder %s734_s15, 1  ;;  %p119_p10 = scmp.lt.s32.totalorder %s734_s15, 3 }
   0xf   : > { %p817_p11 = por %p106_p7, %p34_p0  ;;  %p821_p12 = por %p112_p8, %p40_p3 }
  0x10   : > { %p825_p13 = pnand %p468_p9, %p119_p10  ;;  %s130_s29 = sshll.u32 %s994_s1, 4  ;;  %s131_s29 = int_to_ptr.hbm [resolvable:$true] %s130_s29 }
  0x11   : > { %s1002_s25 = scalar_select %p821_p12, 1, 0 }
  0x12   : > { %p533_p1 = pneg %p825_p13  ;;  %s736_s30 = smov [#allocation5]  }
  0x13   : > { %s132_s4 = sshll.u32 %s736_s30, 4  ;;  %s737_s5 = smov 128   ;;  %s133_s4 = int_to_ptr.vmem [resolvable:$true] %s132_s4 }
  0x14   : > { %p534_p0 = pnand %p533_p1, %p998_p4  ;;  %s738_s6 = smov 8  }
  0x15   : > { %p997_p2 = scmp.ge.s32.totalorder %s734_s15, 2 }
  0x16   : > { %536 = dma.hbm_to_vmem [thread:$0]  (!%p534_p0), %s131_s29, 4096, %s133_s4, [#allocation6], %s737_s5, %s737_s5, %s738_s6  }
  0x17   : > { %145 = sbr.rel (%p997_p2) target bundleno = 66 (0x42), region = 24 }
  0x1c   : > { %148 = sbr.rel (!%p804_p5) target bundleno = 66 (0x42), region = 28  ;;  %s149_s7 = sand.u32 (%p804_p5), 1, %s730_s14  }
  0x1d   : > { %s154_s8 = smul.u32 (%p804_p5), 7, %s734_s15  ;;  %s846_s20 = scalar_lea.sflag (%p804_p5), [#allocation3], %s149_s7 }
  0x1e   : > { %s524_s9 = smul.u32 (%p804_p5), 112, %s149_s7 }
  0x1f   : > { %s155_s10 = ssub.s32 (%p804_p5), 13, %s154_s8 }
  0x20   : > { %p156_p3 = scmp.lt.s32.totalorder (%p804_p5), %s155_s10, 7  ;;  %s153_s27 = scalar_lea.vmem (%p804_p5), [#allocation2], %s524_s9 }
  0x22   : > { %s1015_s10 = smov (!%p156_p3, %s155_s10), 7 }
  0x23   : > { %s487_s11 = sshll.u32 %s1015_s10, 4 }
  0x24   : > { %s160_s17 = ssub.s32 112, %s487_s11 }
  0x25   : > { %s161_s19 = sshll.u32 %s160_s17, 4 }
  0x26   : > { %162 = vsyncadd %s846_s20, %s161_s19  ;;  %p849_p5 = scmp.ne.s32.totalorder %s487_s11, 0  ;;  %s491_s28 = smul.u32 112, %s734_s15 }
  0x27   : > { %s854_s29 = sshll.u32 %s153_s27, 4  ;;  %s477_s30 = sshll.u32 %s1015_s10, 8  ;;  %s171_s29 = int_to_ptr.vmem [resolvable:$true] %s854_s29 }
  0x28   : > { %s166_s6 = scalar_lea.hbm %s993_s0, %s491_s28  ;;  %s616_s9 = sshrl.u32 %s477_s30, 4 }
  0x29   : > { %s168_s7 = sshll.u32 %s166_s6, 4  ;;  %s625_s27 = scalar_lea.hbm %s993_s0, 208  ;;  %s861_s7 = int_to_ptr.hbm [resolvable:$true] %s168_s7 }
  0x2a   : > { %s614_s8 = sshra.s32 %s861_s7, 4  ;;  %s615_s8 = int_to_ptr.hbm [resolvable:$true] %s614_s8 }
  0x2b   : > { %s621_s11 = scalar_lea.hbm %s615_s8, %s616_s9  ;;  %p626_p10 = scmp.lt.s32.totalorder %s615_s8, %s993_s0 }
  0x2c   : > { %p622_p7 = scmp.ne.s32.totalorder %s615_s8, %s621_s11  ;;  %p627_p1 = scmp.lt.s32.totalorder %s625_s27, %s621_s11 }
  0x2e   : > { %p623_p8 = pnand %p622_p7, %p849_p5  ;;  %p628_p0 = por %p627_p1, %p626_p10 }
  0x30   : > { %p624_p9 = pneg %p623_p8 }
  0x32   : > { %p629_p3 = pnand %p628_p0, %p624_p9 }
  0x34   : > { %632 = shalt.err (!%p629_p3)
}
  0x35   : > { %s633_s5 = sshra.s32 %s171_s29, 4  ;;  %s739_s17 = smov [#allocation2]   ;;  %s634_s5 = int_to_ptr.vmem [resolvable:$true] %s633_s5 }
  0x36   : > { %s640_s6 = scalar_lea.vmem %s634_s5, %s616_s9  ;;  %s644_s19 = scalar_lea.vmem %s739_s17, 224 }
  0x37   : > { %p641_p7 = scmp.ne.s32.totalorder %s634_s5, %s640_s6  ;;  %p646_p4 = scmp.lt.s32.totalorder %s644_s19, %s640_s6 }
  0x39   : > { %p642_p8 = pnand %p641_p7, %p849_p5 }
  0x3b   : > { %p643_p2 = pneg %p642_p8 }
  0x3d   : > { %p648_p12 = pnand %p646_p4, %p643_p2 }
  0x3f   : > { %651 = shalt.err (!%p648_p12)
}
  0x40   : > { %s740_s8 = smov 256   ;;  %s741_s11 = smov 16  }
  0x41   : > { %176 = dma.hbm_to_vmem [thread:$0]  (%p849_p5), %s861_s7, %s477_s30, %s171_s29, %s846_s20, %s740_s8, %s740_s8, %s741_s11  }
  0x42 PF: > { %182 = sbr.rel (%p825_p13) target bundleno = 299 (0x12b), region = 32  ;;  %s889_s9 = sand.u32 (!%p825_p13), 1, %s726_s13  }
  0x43   : > { %s525_s27 = smul.u32 (!%p825_p13), 112, %s889_s9  ;;  %s185_s4 = scalar_lea.sflag (!%p825_p13), [#allocation3], %s889_s9 }
  0x45   : > { %s893_s28 = scalar_lea.vmem (!%p825_p13), [#allocation2], %s525_s27 }
  0x47   : > { %709 = dma.done.wait (%p810_p6), %s185_s4, 1792  }
  0x48   : > { %711 = vsyncadd (%p810_p6), %s185_s4, 4294965504  ;;  %p1005_p4 = scmp.eq.s32.totalorder %s786_s16, 0 }
  0x4a   : > { %713 = dma.done.wait (%p1005_p4), [#allocation6], 4096   ;;  %p1006_p12 = pmov %p1005_p4 }
  0x4b   : > { %v257_v0 = vld [vmem:[#allocation5 + $0x78] sm:$0xff]  ;;  %v256_v2 = vld [vmem:[#allocation5 + $0x70] sm:$0xff]  ;;  %v255_v4 = vld [vmem:[#allocation5 + $0x68] sm:$0xff]  ;;  %s526_s10 = smul.u32 56, %s889_s9  ;;  %s362_s22 = scalar_lea.sflag [#allocation4], %s889_s9 }
  0x4c   : > { %715 = vsyncadd (%p1006_p12), [#allocation6], 4294963200  ;;  %v273_v1 = vld [vmem:[#allocation5 + $0xf8] sm:$0xff]  ;;  %492 = vmatpush.msra.mxu2 %v257_v0  ;;  %v272_v3 = vld [vmem:[#allocation5 + $0xf0] sm:$0xff]  ;;  %278 = vmatpush.msra.mxu0 %v257_v0  ;;  %s369_s29 = smul.u32 (%p817_p11), 7, %s786_s16 }
  0x4d   : > { %316 = vmatpush.msra.mxu1 %v273_v1  ;;  %v271_v5 = vld [vmem:[#allocation5 + $0xe8] sm:$0xff]  ;;  %508 = vmatpush.msra.mxu3 %v273_v1  ;;  %v254_v6 = vld [vmem:[#allocation5 + $0x60] sm:$0xff]  ;;  %v253_v8 = vld [vmem:[#allocation5 + $0x58] sm:$0xff]  ;;  %s921_s20 = scalar_lea.vmem [#allocation7], %s526_s10 }
  0x4e   : > { %493 = vmatpush.msra.mxu2 %v256_v2  ;;  %v270_v7 = vld [vmem:[#allocation5 + $0xe0] sm:$0xff]  ;;  %279 = vmatpush.msra.mxu0 %v256_v2  ;;  %v269_v9 = vld [vmem:[#allocation5 + $0xd8] sm:$0xff]  ;;  %v252_v10 = vld [vmem:[#allocation5 + $0x50] sm:$0xff]  ;;  %s370_s30 = ssub.s32 (%p817_p11), 13, %s369_s29 }
  0x4f   : > { %317 = vmatpush.msra.mxu1 %v272_v3  ;;  %509 = vmatpush.msra.mxu3 %v272_v3  ;;  %v268_v11 = vld [vmem:[#allocation5 + $0xd0] sm:$0xff]  ;;  %v251_v12 = vld [vmem:[#allocation5 + $0x48] sm:$0xff]  ;;  %v250_v14 = vld [vmem:[#allocation5 + $0x40] sm:$0xff]  ;;  %p371_p6 = scmp.lt.s32.totalorder (%p817_p11), %s370_s30, 7 }
  0x50   : > { %494 = vmatpush.msra.mxu2 %v255_v4  ;;  %280 = vmatpush.msra.mxu0 %v255_v4  ;;  %v267_v13 = vld [vmem:[#allocation5 + $0xc8] sm:$0xff]  ;;  %v266_v15 = vld [vmem:[#allocation5 + $0xc0] sm:$0xff]  ;;  %v249_v16 = vld [vmem:[#allocation5 + $0x38] sm:$0xff] }
  0x51   : > { %318 = vmatpush.msra.mxu1 %v271_v5  ;;  %510 = vmatpush.msra.mxu3 %v271_v5  ;;  %v265_v17 = vld [vmem:[#allocation5 + $0xb8] sm:$0xff]  ;;  %v248_v18 = vld [vmem:[#allocation5 + $0x30] sm:$0xff]  ;;  %v247_v20 = vld [vmem:[#allocation5 + $0x28] sm:$0xff] }
  0x52   : > { %495 = vmatpush.msra.mxu2 %v254_v6  ;;  %281 = vmatpush.msra.mxu0 %v254_v6  ;;  %v264_v19 = vld [vmem:[#allocation5 + $0xb0] sm:$0xff]  ;;  %v263_v21 = vld [vmem:[#allocation5 + $0xa8] sm:$0xff]  ;;  %v246_v22 = vld [vmem:[#allocation5 + $0x20] sm:$0xff] }
  0x53   : > { %319 = vmatpush.msra.mxu1 %v270_v7  ;;  %511 = vmatpush.msra.mxu3 %v270_v7  ;;  %v262_v23 = vld [vmem:[#allocation5 + $0xa0] sm:$0xff]  ;;  %v245_v24 = vld [vmem:[#allocation5 + $0x18] sm:$0xff]  ;;  %v244_v26 = vld [vmem:[#allocation5 + $0x10] sm:$0xff] }
  0x54   : > { %496 = vmatpush.msra.mxu2 %v253_v8  ;;  %282 = vmatpush.msra.mxu0 %v253_v8  ;;  %v261_v25 = vld [vmem:[#allocation5 + $0x98] sm:$0xff]  ;;  %v260_v27 = vld [vmem:[#allocation5 + $0x90] sm:$0xff]  ;;  %v243_v28 = vld [vmem:[#allocation5 + $0x8] sm:$0xff] }
  0x55   : > { %320 = vmatpush.msra.mxu1 %v269_v9  ;;  %512 = vmatpush.msra.mxu3 %v269_v9  ;;  %v259_v29 = vld [vmem:[#allocation5 + $0x88] sm:$0xff]  ;;  %v242_v30 = vld [vmem:[#allocation5] sm:$0xff] }
  0x56   : > { %497 = vmatpush.msra.mxu2 %v252_v10  ;;  %283 = vmatpush.msra.mxu0 %v252_v10  ;;  %v258_v31 = vld [vmem:[#allocation5 + $0x80] sm:$0xff]  ;;  %v229_v33 = vld [vmem:[%s893_s28 + $0x8] sm:$0xff]  ;;  %v231_v37 = vld [vmem:[%s893_s28 + $0x18] sm:$0xff] }
  0x57   : > { %321 = vmatpush.msra.mxu1 %v268_v11  ;;  %513 = vmatpush.msra.mxu3 %v268_v11  ;;  %v234_v32 = vld [vmem:[%s893_s28 + $0x30] sm:$0xff]  ;;  %v228_v34 = vld [vmem:[%s893_s28] sm:$0xff]  ;;  %v237_v35 = vld [vmem:[%s893_s28 + $0x48] sm:$0xff] }
  0x58   : > { %498 = vmatpush.msra.mxu2 %v251_v12  ;;  %284 = vmatpush.msra.mxu0 %v251_v12  ;;  %v236_v36 = vld [vmem:[%s893_s28 + $0x40] sm:$0xff]  ;;  %v230_v38 = vld [vmem:[%s893_s28 + $0x10] sm:$0xff]  ;;  %v239_v39 = vld [vmem:[%s893_s28 + $0x58] sm:$0xff] }
  0x59   : > { %322 = vmatpush.msra.mxu1 %v267_v13  ;;  %514 = vmatpush.msra.mxu3 %v267_v13  ;;  %v238_v40 = vld [vmem:[%s893_s28 + $0x50] sm:$0xff]  ;;  %v233_v41 = vld [vmem:[%s893_s28 + $0x28] sm:$0xff]  ;;  %v232_v42 = vld [vmem:[%s893_s28 + $0x20] sm:$0xff] }
  0x5a   : > { %499 = vmatpush.msra.mxu2 %v250_v14  ;;  %285 = vmatpush.msra.mxu0 %v250_v14  ;;  %v241_v43 = vld [vmem:[%s893_s28 + $0x68] sm:$0xff]  ;;  %v240_v44 = vld [vmem:[%s893_s28 + $0x60] sm:$0xff]  ;;  %v235_v45 = vld [vmem:[%s893_s28 + $0x38] sm:$0xff] }
  0x5b   : > { %323 = vmatpush.msra.mxu1 %v266_v15  ;;  %515 = vmatpush.msra.mxu3 %v266_v15  ;;  %v583_v46 = vld [vmem:[%s995_s2] ss:$0 sm:$0xff] }
  0x5c   : > { %500 = vmatpush.msra.mxu2 %v249_v16  ;;  %286 = vmatpush.msra.mxu0 %v249_v16 }
  0x5d   : > { %324 = vmatpush.msra.mxu1 %v265_v17  ;;  %516 = vmatpush.msra.mxu3 %v265_v17 }
  0x5e   : > { %501 = vmatpush.msra.mxu2 %v248_v18  ;;  %287 = vmatpush.msra.mxu0 %v248_v18 }
  0x5f   : > { %325 = vmatpush.msra.mxu1 %v264_v19  ;;  %517 = vmatpush.msra.mxu3 %v264_v19 }
  0x60   : > { %502 = vmatpush.msra.mxu2 %v247_v20  ;;  %288 = vmatpush.msra.mxu0 %v247_v20 }
  0x61   : > { %326 = vmatpush.msra.mxu1 %v263_v21  ;;  %518 = vmatpush.msra.mxu3 %v263_v21 }
  0x62   : > { %503 = vmatpush.msra.mxu2 %v246_v22  ;;  %289 = vmatpush.msra.mxu0 %v246_v22 }
  0x63   : > { %327 = vmatpush.msra.mxu1 %v262_v23  ;;  %519 = vmatpush.msra.mxu3 %v262_v23 }
  0x64   : > { %504 = vmatpush.msra.mxu2 %v245_v24  ;;  %290 = vmatpush.msra.mxu0 %v245_v24 }
  0x65   : > { %328 = vmatpush.msra.mxu1 %v261_v25  ;;  %520 = vmatpush.msra.mxu3 %v261_v25 }
  0x66   : > { %505 = vmatpush.msra.mxu2 %v244_v26  ;;  %291 = vmatpush.msra.mxu0 %v244_v26 }
  0x67   : > { %329 = vmatpush.msra.mxu1 %v260_v27  ;;  %521 = vmatpush.msra.mxu3 %v260_v27 }
  0x68   : > { %506 = vmatpush.msra.mxu2 %v243_v28  ;;  %292 = vmatpush.msra.mxu0 %v243_v28 }
  0x69   : > { %330 = vmatpush.msra.mxu1 %v259_v29  ;;  %522 = vmatpush.msra.mxu3 %v259_v29 }
  0x6a   : > { %507 = vmatpush.msra.mxu2 %v242_v30  ;;  %293 = vmatpush.msra.mxu0 %v242_v30 }
  0x6b   : > { %331 = vmatpush.msra.mxu1 %v258_v31  ;;  %303 = vmatmul.f32.vlgmr.msra.gmra.mxu2 %v234_v32 }
  0x6c   : > { %332 = vmatmul.f32.vlgmr.msra.gmra.mxu1 %v229_v33  ;;  %523 = vmatpush.msra.mxu3 %v258_v31 }
  0x6d   : > { %294 = vmatmul.f32.vlgmr.msra.gmra.mxu0 %v228_v34  ;;  %344 = vmatmul.f32.vlgmr.msra.gmra.mxu3 %v237_v35 }
  0x73   : > { %306 = vmatmul.f32.gmra.mxu2 %v236_v36 }
  0x74   : > { %335 = vmatmul.f32.gmra.mxu1 %v231_v37 }
  0x75   : > { %297 = vmatmul.f32.gmra.mxu0 %v230_v38  ;;  %347 = vmatmul.f32.gmra.mxu3 %v239_v39 }
  0x7b   : > { %309 = vmatmul.f32.gmra.mxu2 %v238_v40 }
  0x7c   : > { %338 = vmatmul.f32.gmra.mxu1 %v233_v41 }
  0x7d   : > { %300 = vmatmul.f32.gmra.mxu0 %v232_v42  ;;  %350 = vmatmul.f32.gmra.mxu3 %v241_v43 }
  0x83   : > { %312 = vmatmul.f32.gmra.mxu2 %v240_v44 }
  0x84   : > { %341 = vmatmul.f32.gmra.mxu1 %v235_v45 }
  0xe9   : > { %v333_v47 = vpop.f32.mrf.mxu1 }
  0xea   : > { %v295_v48 = vpop.f32.mrf.mxu0 }
  0xeb   : > { %v296_v49 = vadd.f32 %v583_v46, %v295_v48 }
  0xed   : > { %v334_v50 = vadd.f32 %v333_v47, %v296_v49 }
  0xee   : > { %v304_v51 = vpop.f32.mrf.mxu2 }
  0xef   : > { %354 = vst [vmem:[%s921_s20] sm:$0xff] %v334_v50  ;;  %v305_v2 = vadd.f32 %v583_v46, %v304_v51 }
  0xf0   : > { %v345_v54 = vpop.f32.mrf.mxu3 }
  0xf1   : > { %v336_v52 = vpop.f32.mrf.mxu1 }
  0xf2   : > { %v298_v53 = vpop.f32.mrf.mxu0 }
  0xf3   : > { %v299_v55 = vadd.f32 %v583_v46, %v298_v53 }
  0xf5   : > { %v337_v56 = vadd.f32 %v336_v52, %v299_v55 }
  0xf6   : > { %v307_v57 = vpop.f32.mrf.mxu2 }
  0xf7   : > { %355 = vst [vmem:[%s921_s20 + $0x8] sm:$0xff] %v337_v56  ;;  %v308_v58 = vadd.f32 %v583_v46, %v307_v57 }
  0xf8   : > { %v348_v63 = vpop.f32.mrf.mxu3 }
  0xf9   : > { %v339_v59 = vpop.f32.mrf.mxu1  ;;  %v346_v60 = vadd.f32 %v345_v54, %v308_v58 }
  0xfa   : > { %v301_v61 = vpop.f32.mrf.mxu0 }
  0xfb   : > { %358 = vst [vmem:[%s921_s20 + $0x20] sm:$0xff] %v346_v60  ;;  %v302_v62 = vadd.f32 %v583_v46, %v301_v61 }
  0xfd   : > { %v340_v0 = vadd.f32 %v339_v59, %v302_v62 }
  0xfe   : > { %v310_v1 = vpop.f32.mrf.mxu2 }
  0xff   : > { %356 = vst [vmem:[%s921_s20 + $0x10] sm:$0xff] %v340_v0  ;;  %v311_v3 = vadd.f32 %v583_v46, %v310_v1 }
 0x100   : > { %v351_v8 = vpop.f32.mrf.mxu3 }
 0x101   : > { %v342_v4 = vpop.f32.mrf.mxu1  ;;  %v349_v6 = vadd.f32 %v348_v63, %v311_v3 }
 0x102   : > { %v343_v5 = vadd.f32 %v342_v4, %v305_v2 }
 0x103   : > { %359 = vst [vmem:[%s921_s20 + $0x28] sm:$0xff] %v349_v6 }
 0x104   : > { %357 = vst [vmem:[%s921_s20 + $0x18] sm:$0xff] %v343_v5 }
 0x106   : > { %v313_v7 = vpop.f32.mrf.mxu2 }
 0x107   : > { %v314_v9 = vadd.f32 %v583_v46, %v313_v7  ;;  %368 = sbr.rel (!%p817_p11) target bundleno = 299 (0x12b), region = 44 }
 0x109   : > { %v352_v10 = vadd.f32 %v351_v8, %v314_v9 }
 0x10b   : > { %360 = vst [vmem:[%s921_s20 + $0x30] sm:$0xff] %v352_v10 }
 0x10c   : > { %s1017_s30 = smov (!%p371_p6, %s370_s30), 7 }
 0x10d   : > { %s480_s7 = sshll.u32 %s1017_s30, 3 }
 0x10e   : > { %s374_s5 = ssub.s32 56, %s480_s7 }
 0x10f   : > { %s375_s6 = sshll.u32 %s374_s5, 4 }
 0x110   : > { %376 = vsyncadd %s362_s22, %s375_s6  ;;  %p939_p13 = scmp.ne.s32.totalorder %s480_s7, 0  ;;  %s490_s17 = smul.u32 56, %s786_s16 }
 0x111   : > { %s381_s19 = sshll.u32 %s921_s20, 4  ;;  %s484_s8 = sshll.u32 %s1017_s30, 7  ;;  %s949_s19 = int_to_ptr.vmem [resolvable:$true] %s381_s19 }
 0x112   : > { %s379_s4 = scalar_lea.hbm %s996_s3, %s490_s17  ;;  %s653_s23 = sshra.s32 %s949_s19, 4  ;;  %s654_s23 = int_to_ptr.vmem [resolvable:$true] %s653_s23 }
 0x113   : > { %s383_s28 = sshll.u32 %s379_s4, 4  ;;  %s655_s26 = sshrl.u32 %s484_s8, 4  ;;  %s951_s28 = int_to_ptr.hbm [resolvable:$true] %s383_s28 }
 0x114   : > { %s660_s10 = scalar_lea.vmem %s654_s23, %s655_s26  ;;  %s742_s16 = smov [#allocation7]  }
 0x115   : > { %p661_p11 = scmp.ne.s32.totalorder %s654_s23, %s660_s10  ;;  %s664_s20 = scalar_lea.vmem %s742_s16, 112 }
 0x116   : > { %p666_p9 = scmp.lt.s32.totalorder %s664_s20, %s660_s10 }
 0x117   : > { %p662_p2 = pnand %p661_p11, %p939_p13 }
 0x119   : > { %p663_p5 = pneg %p662_p2 }
 0x11b   : > { %p668_p10 = pnand %p666_p9, %p663_p5 }
 0x11d   : > { %671 = shalt.err (!%p668_p10)
}
 0x11e   : > { %s672_s29 = sshra.s32 %s951_s28, 4  ;;  %s683_s17 = scalar_lea.hbm %s996_s3, 104  ;;  %s673_s29 = int_to_ptr.hbm [resolvable:$true] %s672_s29 }
 0x11f   : > { %s679_s7 = scalar_lea.hbm %s673_s29, %s655_s26  ;;  %p684_p7 = scmp.lt.s32.totalorder %s673_s29, %s996_s3 }
 0x120   : > { %p680_p1 = scmp.ne.s32.totalorder %s673_s29, %s679_s7  ;;  %p685_p8 = scmp.lt.s32.totalorder %s683_s17, %s679_s7 }
 0x122   : > { %p681_p0 = pnand %p680_p1, %p939_p13  ;;  %p686_p4 = por %p685_p8, %p684_p7 }
 0x124   : > { %p682_p3 = pneg %p681_p0 }
 0x126   : > { %p687_p12 = pnand %p686_p4, %p682_p3 }
 0x128   : > { %690 = shalt.err (!%p687_p12)
}
 0x129   : > { %s743_s4 = smov 128   ;;  %s744_s23 = smov 8  }
 0x12a   : > { %389 = dma.vmem_to_hbm [thread:$0]  (%p939_p13), %s949_s19, %s484_s8, %s951_s28, %s362_s22, %s743_s4, %s743_s4, %s744_s23  }
 0x12b PF: > { %s398_s26 = sand.u32 1, %s722_s12   ;;  %p1008_p6 = scmp.ne.s32.totalorder %s1002_s25, 0 }
 0x12c   : > { %p1009_p11 = scmp.ge.s32.totalorder %s734_s15, 2  ;;  %s399_s10 = scalar_lea.sflag [#allocation4], %s398_s26 }
 0x12e   : > { %p538_p2 = pnand %p1009_p11, %p1008_p6 }
 0x130   : > { %p539_p5 = pneg %p538_p2 }
 0x132   : > { %717 = dma.done.wait (%p539_p5), %s399_s10, 896  }
 0x133   : > { %719 = vsyncadd (%p539_p5), %s399_s10, 4294966400  ;;  %p17_p9 = scmp.ge.s32.totalorder %s790_s18, 4   ;;  %s1010_s12 = smov %s726_s13 }
 0x134   : > { %s1011_s13 = smov %s730_s14  ;;  %s1012_s14 = smov %s802_s21 }
 0x135   : > { %s1013_s15 = smov %s790_s18  ;;  %19 = sbr.rel (!%p17_p9) target bundleno = 6 (0x6), region = 81 }
 0x13a   :  { %405 = vsyncpa [#allocation3], 1 }
 0x13b   :  { %407 = vsyncpa [#allocation3 + $0x1], 1 }
 0x13c   :  { %408 = vsyncpa [#allocation6], 1 }
 0x13d   :  { %409 = vsyncpa [#allocation4], 1 }
 0x13e   :  { %411 = vsyncpa [#allocation4 + $0x1], 1 }

// kernel: tpu_custom_call.1
= control target key start
LH: loop header
LB: loop body
LE: loop exit
PB: predicated region body
PF: predicated region fallthrough
CT: control target
= control target key end

     0   :  { %8 = vsyncpa [#allocation3], 0  ;;  %s993_s0 = inlined_call_operand.hbm [shape: f32[100,256], index: 0, kind: input, shape index: {}]   ;;  %s994_s1 = inlined_call_operand.hbm [shape: f32[256,128], index: 1, kind: input, shape index: {}]   ;;  %s995_s2 = inlined_call_operand.vmem [shape: f32[1,128], index: 2, kind: input, shape index: {}]   ;;  %s996_s3 = inlined_call_operand.hbm [shape: f32[100,128], index: 3, kind: output, shape index: {}]  }
   0x1   :  { %10 = vsyncpa [#allocation3 + $0x1], 0 }
   0x2   :  { %11 = vsyncpa [#allocation6], 0 }
   0x3   :  { %12 = vsyncpa [#allocation4], 0 }
   0x4   :  { %14 = vsyncpa [#allocation4 + $0x1], 0  ;;  %s765_s12 = smov 0   ;;  %s767_s13 = smov 0  }
   0x5   :  { %s769_s14 = smov 0   ;;  %s771_s15 = smov 0  }
   0x6 LB: > { %s786_s16 = sadd.s32 4294967295, %s734_s15   ;;  %s467_s17 = sadd.s32 4294967294, %s734_s15   ;;  %s734_s15 = sphi %s771_s15, %s1013_s15   ;;  %s730_s14 = sphi %s769_s14, %s1012_s14   ;;  %s726_s13 = sphi %s767_s13, %s1011_s13   ;;  %s722_s12 = sphi %s765_s12, %s1010_s12  }
   0x7   : > { %s790_s18 = sadd.s32 1, %s734_s15   ;;  %s27_s19 = sadd.s32 1, %s730_s14 }
   0x8   : > { %s24_s20 = ssub.s32 %s734_s15, %s790_s18  ;;  %p34_p0 = scmp.ne.s32.totalorder %s730_s14, %s726_s13 }
   0x9   : > { %p25_p1 = scmp.eq.s32.totalorder %s24_s20, 0  ;;  %p35_p2 = scmp.eq.s32.totalorder %s734_s15, 0 }
   0xa   : > { %p40_p3 = scmp.ne.s32.totalorder %s726_s13, %s722_s12  ;;  %p998_p4 = scmp.eq.s32.totalorder %s786_s16, 0 }
   0xb   : > { %s802_s21 = scalar_select %p25_p1, %s730_s14, %s27_s19  }
   0xc   : > { %p804_p5 = por %p35_p2, %p34_p0  ;;  %p810_p6 = por %p998_p4, %p40_p3 }
   0xd   : > { %p106_p7 = scmp.eq.s32.totalorder %s786_s16, 1  ;;  %p112_p8 = scmp.eq.s32.totalorder %s467_s17, 1 }
   0xe   : > { %p468_p9 = scmp.ge.s32.totalorder %s734_s15, 1  ;;  %p119_p10 = scmp.lt.s32.totalorder %s734_s15, 3 }
   0xf   : > { %p817_p11 = por %p106_p7, %p34_p0  ;;  %p821_p12 = por %p112_p8, %p40_p3 }
  0x10   : > { %p825_p13 = pnand %p468_p9, %p119_p10  ;;  %s130_s29 = sshll.u32 %s994_s1, 4  ;;  %s131_s29 = int_to_ptr.hbm [resolvable:$true] %s130_s29 }
  0x11   : > { %s1002_s25 = scalar_select %p821_p12, 1, 0 }
  0x12   : > { %p533_p1 = pneg %p825_p13  ;;  %s736_s30 = smov [#allocation5]  }
  0x13   : > { %s132_s4 = sshll.u32 %s736_s30, 4  ;;  %s737_s5 = smov 128   ;;  %s133_s4 = int_to_ptr.vmem [resolvable:$true] %s132_s4 }
  0x14   : > { %p534_p0 = pnand %p533_p1, %p998_p4  ;;  %s738_s6 = smov 8  }
  0x15   : > { %p997_p2 = scmp.ge.s32.totalorder %s734_s15, 2 }
  0x16   : > { %536 = dma.hbm_to_vmem [thread:$0]  (!%p534_p0), %s131_s29, 4096, %s133_s4, [#allocation6], %s737_s5, %s737_s5, %s738_s6  }
  0x17   : > { %145 = sbr.rel (%p997_p2) target bundleno = 66 (0x42), region = 24 }
  0x1c   : > { %148 = sbr.rel (!%p804_p5) target bundleno = 66 (0x42), region = 28  ;;  %s149_s7 = sand.u32 (%p804_p5), 1, %s730_s14  }
  0x1d   : > { %s154_s8 = smul.u32 (%p804_p5), 7, %s734_s15  ;;  %s846_s20 = scalar_lea.sflag (%p804_p5), [#allocation3], %s149_s7 }
  0x1e   : > { %s524_s9 = smul.u32 (%p804_p5), 112, %s149_s7 }
  0x1f   : > { %s155_s10 = ssub.s32 (%p804_p5), 13, %s154_s8 }
  0x20   : > { %p156_p3 = scmp.lt.s32.totalorder (%p804_p5), %s155_s10, 7  ;;  %s153_s27 = scalar_lea.vmem (%p804_p5), [#allocation2], %s524_s9 }
  0x22   : > { %s1015_s10 = smov (!%p156_p3, %s155_s10), 7 }
  0x23   : > { %s487_s11 = sshll.u32 %s1015_s10, 4 }
  0x24   : > { %s160_s17 = ssub.s32 112, %s487_s11 }
  0x25   : > { %s161_s19 = sshll.u32 %s160_s17, 4 }
  0x26   : > { %162 = vsyncadd %s846_s20, %s161_s19  ;;  %p849_p5 = scmp.ne.s32.totalorder %s487_s11, 0  ;;  %s491_s28 = smul.u32 112, %s734_s15 }
  0x27   : > { %s854_s29 = sshll.u32 %s153_s27, 4  ;;  %s477_s30 = sshll.u32 %s1015_s10, 8  ;;  %s171_s29 = int_to_ptr.vmem [resolvable:$true] %s854_s29 }
  0x28   : > { %s166_s6 = scalar_lea.hbm %s993_s0, %s491_s28  ;;  %s616_s9 = sshrl.u32 %s477_s30, 4 }
  0x29   : > { %s168_s7 = sshll.u32 %s166_s6, 4  ;;  %s625_s27 = scalar_lea.hbm %s993_s0, 208  ;;  %s861_s7 = int_to_ptr.hbm [resolvable:$true] %s168_s7 }
  0x2a   : > { %s614_s8 = sshra.s32 %s861_s7, 4  ;;  %s615_s8 = int_to_ptr.hbm [resolvable:$true] %s614_s8 }
  0x2b   : > { %s621_s11 = scalar_lea.hbm %s615_s8, %s616_s9  ;;  %p626_p10 = scmp.lt.s32.totalorder %s615_s8, %s993_s0 }
  0x2c   : > { %p622_p7 = scmp.ne.s32.totalorder %s615_s8, %s621_s11  ;;  %p627_p1 = scmp.lt.s32.totalorder %s625_s27, %s621_s11 }
  0x2e   : > { %p623_p8 = pnand %p622_p7, %p849_p5  ;;  %p628_p0 = por %p627_p1, %p626_p10 }
  0x30   : > { %p624_p9 = pneg %p623_p8 }
  0x32   : > { %p629_p3 = pnand %p628_p0, %p624_p9 }
  0x34   : > { %632 = shalt.err (!%p629_p3)
}
  0x35   : > { %s633_s5 = sshra.s32 %s171_s29, 4  ;;  %s739_s17 = smov [#allocation2]   ;;  %s634_s5 = int_to_ptr.vmem [resolvable:$true] %s633_s5 }
  0x36   : > { %s640_s6 = scalar_lea.vmem %s634_s5, %s616_s9  ;;  %s644_s19 = scalar_lea.vmem %s739_s17, 224 }
  0x37   : > { %p641_p7 = scmp.ne.s32.totalorder %s634_s5, %s640_s6  ;;  %p646_p4 = scmp.lt.s32.totalorder %s644_s19, %s640_s6 }
  0x39   : > { %p642_p8 = pnand %p641_p7, %p849_p5 }
  0x3b   : > { %p643_p2 = pneg %p642_p8 }
  0x3d   : > { %p648_p12 = pnand %p646_p4, %p643_p2 }
  0x3f   : > { %651 = shalt.err (!%p648_p12)
}
  0x40   : > { %s740_s8 = smov 256   ;;  %s741_s11 = smov 16  }
  0x41   : > { %176 = dma.hbm_to_vmem [thread:$0]  (%p849_p5), %s861_s7, %s477_s30, %s171_s29, %s846_s20, %s740_s8, %s740_s8, %s741_s11  }
  0x42 PF: > { %182 = sbr.rel (%p825_p13) target bundleno = 299 (0x12b), region = 32  ;;  %s889_s9 = sand.u32 (!%p825_p13), 1, %s726_s13  }
  0x43   : > { %s525_s27 = smul.u32 (!%p825_p13), 112, %s889_s9  ;;  %s185_s4 = scalar_lea.sflag (!%p825_p13), [#allocation3], %s889_s9 }
  0x45   : > { %s893_s28 = scalar_lea.vmem (!%p825_p13), [#allocation2], %s525_s27 }
  0x47   : > { %709 = dma.done.wait (%p810_p6), %s185_s4, 1792  }
  0x48   : > { %711 = vsyncadd (%p810_p6), %s185_s4, 4294965504  ;;  %p1005_p4 = scmp.eq.s32.totalorder %s786_s16, 0 }
  0x4a   : > { %713 = dma.done.wait (%p1005_p4), [#allocation6], 4096   ;;  %p1006_p12 = pmov %p1005_p4 }
  0x4b   : > { %v257_v0 = vld [vmem:[#allocation5 + $0x78] sm:$0xff]  ;;  %v256_v2 = vld [vmem:[#allocation5 + $0x70] sm:$0xff]  ;;  %v255_v4 = vld [vmem:[#allocation5 + $0x68] sm:$0xff]  ;;  %s526_s10 = smul.u32 56, %s889_s9  ;;  %s362_s22 = scalar_lea.sflag [#allocation4], %s889_s9 }
  0x4c   : > { %715 = vsyncadd (%p1006_p12), [#allocation6], 4294963200  ;;  %v273_v1 = vld [vmem:[#allocation5 + $0xf8] sm:$0xff]  ;;  %492 = vmatpush.msra.mxu2 %v257_v0  ;;  %v272_v3 = vld [vmem:[#allocation5 + $0xf0] sm:$0xff]  ;;  %278 = vmatpush.msra.mxu0 %v257_v0  ;;  %s369_s29 = smul.u32 (%p817_p11), 7, %s786_s16 }
  0x4d   : > { %316 = vmatpush.msra.mxu1 %v273_v1  ;;  %v271_v5 = vld [vmem:[#allocation5 + $0xe8] sm:$0xff]  ;;  %508 = vmatpush.msra.mxu3 %v273_v1  ;;  %v254_v6 = vld [vmem:[#allocation5 + $0x60] sm:$0xff]  ;;  %v253_v8 = vld [vmem:[#allocation5 + $0x58] sm:$0xff]  ;;  %s921_s20 = scalar_lea.vmem [#allocation7], %s526_s10 }
  0x4e   : > { %493 = vmatpush.msra.mxu2 %v256_v2  ;;  %v270_v7 = vld [vmem:[#allocation5 + $0xe0] sm:$0xff]  ;;  %279 = vmatpush.msra.mxu0 %v256_v2  ;;  %v269_v9 = vld [vmem:[#allocation5 + $0xd8] sm:$0xff]  ;;  %v252_v10 = vld [vmem:[#allocation5 + $0x50] sm:$0xff]  ;;  %s370_s30 = ssub.s32 (%p817_p11), 13, %s369_s29 }
  0x4f   : > { %317 = vmatpush.msra.mxu1 %v272_v3  ;;  %509 = vmatpush.msra.mxu3 %v272_v3  ;;  %v268_v11 = vld [vmem:[#allocation5 + $0xd0] sm:$0xff]  ;;  %v251_v12 = vld [vmem:[#allocation5 + $0x48] sm:$0xff]  ;;  %v250_v14 = vld [vmem:[#allocation5 + $0x40] sm:$0xff]  ;;  %p371_p6 = scmp.lt.s32.totalorder (%p817_p11), %s370_s30, 7 }
  0x50   : > { %494 = vmatpush.msra.mxu2 %v255_v4  ;;  %280 = vmatpush.msra.mxu0 %v255_v4  ;;  %v267_v13 = vld [vmem:[#allocation5 + $0xc8] sm:$0xff]  ;;  %v266_v15 = vld [vmem:[#allocation5 + $0xc0] sm:$0xff]  ;;  %v249_v16 = vld [vmem:[#allocation5 + $0x38] sm:$0xff] }
  0x51   : > { %318 = vmatpush.msra.mxu1 %v271_v5  ;;  %510 = vmatpush.msra.mxu3 %v271_v5  ;;  %v265_v17 = vld [vmem:[#allocation5 + $0xb8] sm:$0xff]  ;;  %v248_v18 = vld [vmem:[#allocation5 + $0x30] sm:$0xff]  ;;  %v247_v20 = vld [vmem:[#allocation5 + $0x28] sm:$0xff] }
  0x52   : > { %495 = vmatpush.msra.mxu2 %v254_v6  ;;  %281 = vmatpush.msra.mxu0 %v254_v6  ;;  %v264_v19 = vld [vmem:[#allocation5 + $0xb0] sm:$0xff]  ;;  %v263_v21 = vld [vmem:[#allocation5 + $0xa8] sm:$0xff]  ;;  %v246_v22 = vld [vmem:[#allocation5 + $0x20] sm:$0xff] }
  0x53   : > { %319 = vmatpush.msra.mxu1 %v270_v7  ;;  %511 = vmatpush.msra.mxu3 %v270_v7  ;;  %v262_v23 = vld [vmem:[#allocation5 + $0xa0] sm:$0xff]  ;;  %v245_v24 = vld [vmem:[#allocation5 + $0x18] sm:$0xff]  ;;  %v244_v26 = vld [vmem:[#allocation5 + $0x10] sm:$0xff] }
  0x54   : > { %496 = vmatpush.msra.mxu2 %v253_v8  ;;  %282 = vmatpush.msra.mxu0 %v253_v8  ;;  %v261_v25 = vld [vmem:[#allocation5 + $0x98] sm:$0xff]  ;;  %v260_v27 = vld [vmem:[#allocation5 + $0x90] sm:$0xff]  ;;  %v243_v28 = vld [vmem:[#allocation5 + $0x8] sm:$0xff] }
  0x55   : > { %320 = vmatpush.msra.mxu1 %v269_v9  ;;  %512 = vmatpush.msra.mxu3 %v269_v9  ;;  %v259_v29 = vld [vmem:[#allocation5 + $0x88] sm:$0xff]  ;;  %v242_v30 = vld [vmem:[#allocation5] sm:$0xff] }
  0x56   : > { %497 = vmatpush.msra.mxu2 %v252_v10  ;;  %283 = vmatpush.msra.mxu0 %v252_v10  ;;  %v258_v31 = vld [vmem:[#allocation5 + $0x80] sm:$0xff]  ;;  %v229_v33 = vld [vmem:[%s893_s28 + $0x8] sm:$0xff]  ;;  %v231_v37 = vld [vmem:[%s893_s28 + $0x18] sm:$0xff] }
  0x57   : > { %321 = vmatpush.msra.mxu1 %v268_v11  ;;  %513 = vmatpush.msra.mxu3 %v268_v11  ;;  %v234_v32 = vld [vmem:[%s893_s28 + $0x30] sm:$0xff]  ;;  %v228_v34 = vld [vmem:[%s893_s28] sm:$0xff]  ;;  %v237_v35 = vld [vmem:[%s893_s28 + $0x48] sm:$0xff] }
  0x58   : > { %498 = vmatpush.msra.mxu2 %v251_v12  ;;  %284 = vmatpush.msra.mxu0 %v251_v12  ;;  %v236_v36 = vld [vmem:[%s893_s28 + $0x40] sm:$0xff]  ;;  %v230_v38 = vld [vmem:[%s893_s28 + $0x10] sm:$0xff]  ;;  %v239_v39 = vld [vmem:[%s893_s28 + $0x58] sm:$0xff] }
  0x59   : > { %322 = vmatpush.msra.mxu1 %v267_v13  ;;  %514 = vmatpush.msra.mxu3 %v267_v13  ;;  %v238_v40 = vld [vmem:[%s893_s28 + $0x50] sm:$0xff]  ;;  %v233_v41 = vld [vmem:[%s893_s28 + $0x28] sm:$0xff]  ;;  %v232_v42 = vld [vmem:[%s893_s28 + $0x20] sm:$0xff] }
  0x5a   : > { %499 = vmatpush.msra.mxu2 %v250_v14  ;;  %285 = vmatpush.msra.mxu0 %v250_v14  ;;  %v241_v43 = vld [vmem:[%s893_s28 + $0x68] sm:$0xff]  ;;  %v240_v44 = vld [vmem:[%s893_s28 + $0x60] sm:$0xff]  ;;  %v235_v45 = vld [vmem:[%s893_s28 + $0x38] sm:$0xff] }
  0x5b   : > { %323 = vmatpush.msra.mxu1 %v266_v15  ;;  %515 = vmatpush.msra.mxu3 %v266_v15  ;;  %v583_v46 = vld [vmem:[%s995_s2] ss:$0 sm:$0xff] }
  0x5c   : > { %500 = vmatpush.msra.mxu2 %v249_v16  ;;  %286 = vmatpush.msra.mxu0 %v249_v16 }
  0x5d   : > { %324 = vmatpush.msra.mxu1 %v265_v17  ;;  %516 = vmatpush.msra.mxu3 %v265_v17 }
  0x5e   : > { %501 = vmatpush.msra.mxu2 %v248_v18  ;;  %287 = vmatpush.msra.mxu0 %v248_v18 }
  0x5f   : > { %325 = vmatpush.msra.mxu1 %v264_v19  ;;  %517 = vmatpush.msra.mxu3 %v264_v19 }
  0x60   : > { %502 = vmatpush.msra.mxu2 %v247_v20  ;;  %288 = vmatpush.msra.mxu0 %v247_v20 }
  0x61   : > { %326 = vmatpush.msra.mxu1 %v263_v21  ;;  %518 = vmatpush.msra.mxu3 %v263_v21 }
  0x62   : > { %503 = vmatpush.msra.mxu2 %v246_v22  ;;  %289 = vmatpush.msra.mxu0 %v246_v22 }
  0x63   : > { %327 = vmatpush.msra.mxu1 %v262_v23  ;;  %519 = vmatpush.msra.mxu3 %v262_v23 }
  0x64   : > { %504 = vmatpush.msra.mxu2 %v245_v24  ;;  %290 = vmatpush.msra.mxu0 %v245_v24 }
  0x65   : > { %328 = vmatpush.msra.mxu1 %v261_v25  ;;  %520 = vmatpush.msra.mxu3 %v261_v25 }
  0x66   : > { %505 = vmatpush.msra.mxu2 %v244_v26  ;;  %291 = vmatpush.msra.mxu0 %v244_v26 }
  0x67   : > { %329 = vmatpush.msra.mxu1 %v260_v27  ;;  %521 = vmatpush.msra.mxu3 %v260_v27 }
  0x68   : > { %506 = vmatpush.msra.mxu2 %v243_v28  ;;  %292 = vmatpush.msra.mxu0 %v243_v28 }
  0x69   : > { %330 = vmatpush.msra.mxu1 %v259_v29  ;;  %522 = vmatpush.msra.mxu3 %v259_v29 }
  0x6a   : > { %507 = vmatpush.msra.mxu2 %v242_v30  ;;  %293 = vmatpush.msra.mxu0 %v242_v30 }
  0x6b   : > { %331 = vmatpush.msra.mxu1 %v258_v31  ;;  %303 = vmatmul.f32.vlgmr.msra.gmra.mxu2 %v234_v32 }
  0x6c   : > { %332 = vmatmul.f32.vlgmr.msra.gmra.mxu1 %v229_v33  ;;  %523 = vmatpush.msra.mxu3 %v258_v31 }
  0x6d   : > { %294 = vmatmul.f32.vlgmr.msra.gmra.mxu0 %v228_v34  ;;  %344 = vmatmul.f32.vlgmr.msra.gmra.mxu3 %v237_v35 }
  0x73   : > { %306 = vmatmul.f32.gmra.mxu2 %v236_v36 }
  0x74   : > { %335 = vmatmul.f32.gmra.mxu1 %v231_v37 }
  0x75   : > { %297 = vmatmul.f32.gmra.mxu0 %v230_v38  ;;  %347 = vmatmul.f32.gmra.mxu3 %v239_v39 }
  0x7b   : > { %309 = vmatmul.f32.gmra.mxu2 %v238_v40 }
  0x7c   : > { %338 = vmatmul.f32.gmra.mxu1 %v233_v41 }
  0x7d   : > { %300 = vmatmul.f32.gmra.mxu0 %v232_v42  ;;  %350 = vmatmul.f32.gmra.mxu3 %v241_v43 }
  0x83   : > { %312 = vmatmul.f32.gmra.mxu2 %v240_v44 }
  0x84   : > { %341 = vmatmul.f32.gmra.mxu1 %v235_v45 }
  0xe9   : > { %v333_v47 = vpop.f32.mrf.mxu1 }
  0xea   : > { %v295_v48 = vpop.f32.mrf.mxu0 }
  0xeb   : > { %v296_v49 = vadd.f32 %v583_v46, %v295_v48 }
  0xed   : > { %v334_v50 = vadd.f32 %v333_v47, %v296_v49 }
  0xee   : > { %v304_v51 = vpop.f32.mrf.mxu2 }
  0xef   : > { %354 = vst [vmem:[%s921_s20] sm:$0xff] %v334_v50  ;;  %v305_v2 = vadd.f32 %v583_v46, %v304_v51 }
  0xf0   : > { %v345_v54 = vpop.f32.mrf.mxu3 }
  0xf1   : > { %v336_v52 = vpop.f32.mrf.mxu1 }
  0xf2   : > { %v298_v53 = vpop.f32.mrf.mxu0 }
  0xf3   : > { %v299_v55 = vadd.f32 %v583_v46, %v298_v53 }
  0xf5   : > { %v337_v56 = vadd.f32 %v336_v52, %v299_v55 }
  0xf6   : > { %v307_v57 = vpop.f32.mrf.mxu2 }
  0xf7   : > { %355 = vst [vmem:[%s921_s20 + $0x8] sm:$0xff] %v337_v56  ;;  %v308_v58 = vadd.f32 %v583_v46, %v307_v57 }
  0xf8   : > { %v348_v63 = vpop.f32.mrf.mxu3 }
  0xf9   : > { %v339_v59 = vpop.f32.mrf.mxu1  ;;  %v346_v60 = vadd.f32 %v345_v54, %v308_v58 }
  0xfa   : > { %v301_v61 = vpop.f32.mrf.mxu0 }
  0xfb   : > { %358 = vst [vmem:[%s921_s20 + $0x20] sm:$0xff] %v346_v60  ;;  %v302_v62 = vadd.f32 %v583_v46, %v301_v61 }
  0xfd   : > { %v340_v0 = vadd.f32 %v339_v59, %v302_v62 }
  0xfe   : > { %v310_v1 = vpop.f32.mrf.mxu2 }
  0xff   : > { %356 = vst [vmem:[%s921_s20 + $0x10] sm:$0xff] %v340_v0  ;;  %v311_v3 = vadd.f32 %v583_v46, %v310_v1 }
 0x100   : > { %v351_v8 = vpop.f32.mrf.mxu3 }
 0x101   : > { %v342_v4 = vpop.f32.mrf.mxu1  ;;  %v349_v6 = vadd.f32 %v348_v63, %v311_v3 }
 0x102   : > { %v343_v5 = vadd.f32 %v342_v4, %v305_v2 }
 0x103   : > { %359 = vst [vmem:[%s921_s20 + $0x28] sm:$0xff] %v349_v6 }
 0x104   : > { %357 = vst [vmem:[%s921_s20 + $0x18] sm:$0xff] %v343_v5 }
 0x106   : > { %v313_v7 = vpop.f32.mrf.mxu2 }
 0x107   : > { %v314_v9 = vadd.f32 %v583_v46, %v313_v7  ;;  %368 = sbr.rel (!%p817_p11) target bundleno = 299 (0x12b), region = 44 }
 0x109   : > { %v352_v10 = vadd.f32 %v351_v8, %v314_v9 }
 0x10b   : > { %360 = vst [vmem:[%s921_s20 + $0x30] sm:$0xff] %v352_v10 }
 0x10c   : > { %s1017_s30 = smov (!%p371_p6, %s370_s30), 7 }
 0x10d   : > { %s480_s7 = sshll.u32 %s1017_s30, 3 }
 0x10e   : > { %s374_s5 = ssub.s32 56, %s480_s7 }
 0x10f   : > { %s375_s6 = sshll.u32 %s374_s5, 4 }
 0x110   : > { %376 = vsyncadd %s362_s22, %s375_s6  ;;  %p939_p13 = scmp.ne.s32.totalorder %s480_s7, 0  ;;  %s490_s17 = smul.u32 56, %s786_s16 }
 0x111   : > { %s381_s19 = sshll.u32 %s921_s20, 4  ;;  %s484_s8 = sshll.u32 %s1017_s30, 7  ;;  %s949_s19 = int_to_ptr.vmem [resolvable:$true] %s381_s19 }
 0x112   : > { %s379_s4 = scalar_lea.hbm %s996_s3, %s490_s17  ;;  %s653_s23 = sshra.s32 %s949_s19, 4  ;;  %s654_s23 = int_to_ptr.vmem [resolvable:$true] %s653_s23 }
 0x113   : > { %s383_s28 = sshll.u32 %s379_s4, 4  ;;  %s655_s26 = sshrl.u32 %s484_s8, 4  ;;  %s951_s28 = int_to_ptr.hbm [resolvable:$true] %s383_s28 }
 0x114   : > { %s660_s10 = scalar_lea.vmem %s654_s23, %s655_s26  ;;  %s742_s16 = smov [#allocation7]  }
 0x115   : > { %p661_p11 = scmp.ne.s32.totalorder %s654_s23, %s660_s10  ;;  %s664_s20 = scalar_lea.vmem %s742_s16, 112 }
 0x116   : > { %p666_p9 = scmp.lt.s32.totalorder %s664_s20, %s660_s10 }
 0x117   : > { %p662_p2 = pnand %p661_p11, %p939_p13 }
 0x119   : > { %p663_p5 = pneg %p662_p2 }
 0x11b   : > { %p668_p10 = pnand %p666_p9, %p663_p5 }
 0x11d   : > { %671 = shalt.err (!%p668_p10)
}
 0x11e   : > { %s672_s29 = sshra.s32 %s951_s28, 4  ;;  %s683_s17 = scalar_lea.hbm %s996_s3, 104  ;;  %s673_s29 = int_to_ptr.hbm [resolvable:$true] %s672_s29 }
 0x11f   : > { %s679_s7 = scalar_lea.hbm %s673_s29, %s655_s26  ;;  %p684_p7 = scmp.lt.s32.totalorder %s673_s29, %s996_s3 }
 0x120   : > { %p680_p1 = scmp.ne.s32.totalorder %s673_s29, %s679_s7  ;;  %p685_p8 = scmp.lt.s32.totalorder %s683_s17, %s679_s7 }
 0x122   : > { %p681_p0 = pnand %p680_p1, %p939_p13  ;;  %p686_p4 = por %p685_p8, %p684_p7 }
 0x124   : > { %p682_p3 = pneg %p681_p0 }
 0x126   : > { %p687_p12 = pnand %p686_p4, %p682_p3 }
 0x128   : > { %690 = shalt.err (!%p687_p12)
}
 0x129   : > { %s743_s4 = smov 128   ;;  %s744_s23 = smov 8  }
 0x12a   : > { %389 = dma.vmem_to_hbm [thread:$0]  (%p939_p13), %s949_s19, %s484_s8, %s951_s28, %s362_s22, %s743_s4, %s743_s4, %s744_s23  }
 0x12b PF: > { %s398_s26 = sand.u32 1, %s722_s12   ;;  %p1008_p6 = scmp.ne.s32.totalorder %s1002_s25, 0 }
 0x12c   : > { %p1009_p11 = scmp.ge.s32.totalorder %s734_s15, 2  ;;  %s399_s10 = scalar_lea.sflag [#allocation4], %s398_s26 }
 0x12e   : > { %p538_p2 = pnand %p1009_p11, %p1008_p6 }
 0x130   : > { %p539_p5 = pneg %p538_p2 }
 0x132   : > { %717 = dma.done.wait (%p539_p5), %s399_s10, 896  }
 0x133   : > { %719 = vsyncadd (%p539_p5), %s399_s10, 4294966400  ;;  %p17_p9 = scmp.ge.s32.totalorder %s790_s18, 4   ;;  %s1010_s12 = smov %s726_s13 }
 0x134   : > { %s1011_s13 = smov %s730_s14  ;;  %s1012_s14 = smov %s802_s21 }
 0x135   : > { %s1013_s15 = smov %s790_s18  ;;  %19 = sbr.rel (!%p17_p9) target bundleno = 6 (0x6), region = 81 }
 0x13a   :  { %405 = vsyncpa [#allocation3], 1 }
 0x13b   :  { %407 = vsyncpa [#allocation3 + $0x1], 1 }
 0x13c   :  { %408 = vsyncpa [#allocation6], 1 }
 0x13d   :  { %409 = vsyncpa [#allocation4], 1 }
 0x13e   :  { %411 = vsyncpa [#allocation4 + $0x1], 1 }

</bundles_post_ra>
